<compile_context>
chip_gen: v7x
topology: tpu7x:2x2x1
jax: 0.10.0
libtpu: 0.0.40
codegen_flags: <defaults>
</compile_context>

<pallas_src>
from functools import partial as _functools_partial

import jax
import jax.numpy as jnp
from jax.experimental import pallas as pl
from jax.experimental.pallas import tpu as pltpu


def _round_up(x: int, m: int) -> int:
    return ((x + m - 1) // m) * m


def _cdiv(a: int, b: int) -> int:
    return -(-a // b)


def _nll_loss_kernel(pred_ref, target_ref, out_ref, acc_ref, *, tiles_per_shard: int):
    t = pl.program_id(1)  # tile index within this shard (reduction axis)

    @pl.when(t == 0)
    def _init():
        acc_ref[...] = jnp.zeros_like(acc_ref)
        out_ref[...] = jnp.zeros_like(out_ref)

    pred = pred_ref[...]                       # (tile_n, C), native dtype (e.g. bf16)
    tgt = target_ref[...]                      # (tile_n, 1) int32
    tn, c = pred.shape

    # One-hot gather pred[i, target[i]] via lane-iota compare + select, in the
    # native dtype.  Padded / garbage rows carry an out-of-range target class
    # (== C) injected by the wrapper, so they never match.
    class_ids = jax.lax.broadcasted_iota(jnp.int32, (tn, c), 1)
    picked = jnp.where(class_ids == tgt, pred, jnp.zeros((), dtype=pred.dtype))

    # Sublane-only reduce into the resident f32 vector accumulator.
    acc_ref[...] += jnp.sum(picked, axis=0, keepdims=True, dtype=jnp.float32)

    @pl.when(t == tiles_per_shard - 1)
    def _finalize():
        shard_sum = jnp.sum(acc_ref[...])      # single cross-lane reduce per shard
        out_ref[...] = jnp.broadcast_to(shard_sum, out_ref.shape)


def nll_loss(pred, target, *, target_tile_bytes: int = 2 * 1024 * 1024,
             max_tile_rows: int | None = None):
    """F.nll_loss(pred, target) with mean reduction as a streaming Pallas TPU kernel.

    Note: for tiny problems (N*C of a few hundred elements) plain XLA
    (take_along_axis + mean) is cheaper than any kernel launch; this path
    pays off once N is in the thousands (PointNet++: N = B * npoints).
    """
    n, c = pred.shape
    itemsize = jnp.dtype(pred.dtype).itemsize

    # Packed-sublane alignment: 8 for f32, 16 for bf16, 32 for int8/fp8.
    sub = max(8, 32 // itemsize)

    # Byte-adaptive tile: ~target_tile_bytes of pred per buffer.
    row_bytes = _round_up(c, 128) * itemsize
    tile_n = max(sub, (target_tile_bytes // row_bytes) // sub * sub)
    if max_tile_rows is not None:
        tile_n = min(tile_n, max(sub, _round_up(max_tile_rows, sub)))
    if n <= sub:
        tile_n = n                      # single tiny block == full array dims
    else:
        tile_n = min(tile_n, (n // sub) * sub)   # keep block <= array extent

    tiles_total = _cdiv(n, tile_n)
    num_shards = 2 if tiles_total >= 2 else 1     # 2-TC split (free on 1-TC chips)
    tiles_per_shard = _cdiv(tiles_total, num_shards)
    padded_rows = num_shards * tiles_per_shard * tile_n

    # Pad targets with an out-of-range class so padded rows of the last
    # (partial) tile and clamped "wasted" tiles contribute exactly 0.
    tgt = target.astype(jnp.int32).reshape(n, 1)
    tgt = jnp.pad(tgt, ((0, padded_rows - n), (0, 0)), constant_values=c)

    kernel = _functools_partial(_nll_loss_kernel, tiles_per_shard=tiles_per_shard)

    partials = pl.pallas_call(
        kernel,
        out_shape=jax.ShapeDtypeStruct((num_shards, 8, 128), jnp.float32),
        grid=(num_shards, tiles_per_shard),
        in_specs=[
            # pred row tile (native dtype); clamp so wasted tiles re-read a
            # valid block instead of going out of bounds.
            pl.BlockSpec(
                (tile_n, c),
                lambda s, t: (jnp.minimum(s * tiles_per_shard + t, tiles_total - 1), 0),
            ),
            # target column tile (kept in VMEM; SMEM would pad to 128 lanes).
            pl.BlockSpec((tile_n, 1), lambda s, t: (s * tiles_per_shard + t, 0)),
        ],
        out_specs=pl.BlockSpec((1, 8, 128), lambda s, t: (s, 0, 0)),
        scratch_shapes=[pltpu.VMEM((1, c), jnp.float32)],  # per-core vector accumulator
        compiler_params=pltpu.CompilerParams(
            dimension_semantics=("parallel", "arbitrary"),
            vmem_limit_bytes=32 * 1024 * 1024,   # safe on v5e/v6e/v7x
        ),
    )(pred, tgt)

    return -(jnp.sum(partials[:, 0, 0]) / n)


if __name__ == "__main__":
    key = jax.random.PRNGKey(0)
    k_logits, k_target = jax.random.split(key)

    # Small classification-style case (single tile, single shard, f32).
    N, C = 8, 16
    logits = jax.random.normal(k_logits, (N, C), dtype=jnp.float32)
    pred = jax.nn.log_softmax(logits, axis=-1)
    target = jax.random.randint(k_target, (N,), 0, C, dtype=jnp.int32)

    loss = nll_loss(pred, target)
    jax.block_until_ready(loss)

    ref = -jnp.mean(pred[jnp.arange(N), target])
    assert jnp.allclose(loss, ref, atol=1e-6, rtol=1e-6), (loss, ref)

    # Larger case: exercises the 2-shard parallel split (grid (2, 2)), the
    # clamped wasted tile, the partial last tile with padded invalid targets,
    # and the native-bf16 input path.
    N2, C2 = 1000, 40
    k2, k3 = jax.random.split(k_target)
    logits2 = jax.random.normal(k2, (N2, C2), dtype=jnp.float32)
    pred2 = jax.nn.log_softmax(logits2, axis=-1).astype(jnp.bfloat16)
    target2 = jax.random.randint(k3, (N2,), 0, C2, dtype=jnp.int32)

    loss2 = nll_loss(pred2, target2, max_tile_rows=384)
    jax.block_until_ready(loss2)

    ref2 = -jnp.mean(pred2.astype(jnp.float32)[jnp.arange(N2), target2])
    assert jnp.allclose(loss2, ref2, atol=1e-3, rtol=1e-3), (loss2, ref2)

    print("KERNEL_OK")
</pallas_src>

<mosaic_0001>
module attributes {stable_mosaic.version = 11 : i64} {
  func.func @_nll_loss_kernel(%arg0: i32, %arg1: i32, %arg2: memref<8x16xf32, #tpu.memory_space<vmem>>, %arg3: memref<8x1xi32, #tpu.memory_space<vmem>>, %arg4: memref<1x8x128xf32, #tpu.memory_space<vmem>>, %arg5: memref<1x16xf32, #tpu.memory_space<vmem>>) attributes {dimension_semantics = [#tpu.dimension_semantics<parallel>, #tpu.dimension_semantics<arbitrary>], iteration_bounds = array<i64: 1, 1>, scalar_prefetch = 0 : i64, scratch_operands = 1 : i64, tpu.core_type = #tpu.core_type<tc>, window_params = [{transform_indices = @transform_0, window_bounds = array<i64: 8, 16>}, {transform_indices = @transform_1, window_bounds = array<i64: 8, 1>}, {transform_indices = @transform_2, window_bounds = array<i64: 1, 8, 128>}]} {
    %c0_i32 = arith.constant 0 : i32
    %0 = arith.cmpi eq, %arg1, %c0_i32 : i32
    %1 = arith.extui %0 : i1 to i32
    %c0_i32_0 = arith.constant 0 : i32
    %2 = arith.cmpi ne, %1, %c0_i32_0 : i32
    scf.if %2 {
      %cst_11 = arith.constant 0.000000e+00 : f32
      %18 = vector.broadcast %cst_11 : f32 to vector<1x16xf32>
      %c0_12 = arith.constant 0 : index
      %c0_13 = arith.constant 0 : index
      %19 = vector.load %arg5[%c0_12, %c0_13] : memref<1x16xf32, #tpu.memory_space<vmem>>, vector<1x16xf32>
      tpu.vector_store %arg5[%c0_12, %c0_13], %18 {strides = array<i32>} : memref<1x16xf32, #tpu.memory_space<vmem>>, vector<1x16xf32>,
      %cst_14 = arith.constant 0.000000e+00 : f32
      %20 = vector.broadcast %cst_14 : f32 to vector<1x8x128xf32>
      %c0_15 = arith.constant 0 : index
      %c0_16 = arith.constant 0 : index
      %c0_17 = arith.constant 0 : index
      %21 = vector.load %arg4[%c0_15, %c0_16, %c0_17] : memref<1x8x128xf32, #tpu.memory_space<vmem>>, vector<1x8x128xf32>
      tpu.vector_store %arg4[%c0_15, %c0_16, %c0_17], %20 {strides = array<i32>} : memref<1x8x128xf32, #tpu.memory_space<vmem>>, vector<1x8x128xf32>,
    } else {
    }
    %c0 = arith.constant 0 : index
    %c0_1 = arith.constant 0 : index
    %3 = vector.load %arg2[%c0, %c0_1] : memref<8x16xf32, #tpu.memory_space<vmem>>, vector<8x16xf32>
    %c0_2 = arith.constant 0 : index
    %c0_3 = arith.constant 0 : index
    %4 = vector.load %arg3[%c0_2, %c0_3] : memref<8x1xi32, #tpu.memory_space<vmem>>, vector<8x1xi32>
    %5 = tpu.iota {dimensions = array<i32: 1>} : vector<8x16xi32>
    %6 = vector.broadcast %4 : vector<8x1xi32> to vector<8x16xi32>
    %7 = arith.cmpi eq, %5, %6 : vector<8x16xi32>
    %cst = arith.constant 0.000000e+00 : f32
    %8 = vector.broadcast %cst : f32 to vector<8x16xf32>
    %9 = arith.select %7, %3, %8 : vector<8x16xi1>, vector<8x16xf32>
    %c0_4 = arith.constant 0 : index
    %c0_5 = arith.constant 0 : index
    %10 = vector.load %arg5[%c0_4, %c0_5] : memref<1x16xf32, #tpu.memory_space<vmem>>, vector<1x16xf32>
    %cst_6 = arith.constant dense<0.000000e+00> : vector<16xf32>
    %11 = vector.multi_reduction <add>, %9, %cst_6 [0] : vector<8x16xf32> to vector<16xf32>
    %12 = vector.shape_cast %11 : vector<16xf32> to vector<1x16xf32>
    %13 = arith.addf %10, %12 : vector<1x16xf32>
    %c0_7 = arith.constant 0 : index
    %c0_8 = arith.constant 0 : index
    %14 = vector.load %arg5[%c0_7, %c0_8] : memref<1x16xf32, #tpu.memory_space<vmem>>, vector<1x16xf32>
    tpu.vector_store %arg5[%c0_7, %c0_8], %13 {strides = array<i32>} : memref<1x16xf32, #tpu.memory_space<vmem>>, vector<1x16xf32>,
    %c0_i32_9 = arith.constant 0 : i32
    %15 = arith.cmpi eq, %arg1, %c0_i32_9 : i32
    %16 = arith.extui %15 : i1 to i32
    %c0_i32_10 = arith.constant 0 : i32
    %17 = arith.cmpi ne, %16, %c0_i32_10 : i32
    scf.if %17 {
      %c0_11 = arith.constant 0 : index
      %c0_12 = arith.constant 0 : index
      %18 = vector.load %arg5[%c0_11, %c0_12] : memref<1x16xf32, #tpu.memory_space<vmem>>, vector<1x16xf32>
      %19 = vector.shape_cast %18 : vector<1x16xf32> to vector<1x1x16xf32>
      %cst_13 = arith.constant dense<0.000000e+00> : vector<1xf32>
      %20 = vector.multi_reduction <add>, %19, %cst_13 [1, 2] : vector<1x1x16xf32> to vector<1xf32>
      %21 = vector.shape_cast %20 : vector<1xf32> to vector<1x1x1xf32>
      %22 = vector.extract %21[0, 0, 0] : f32 from vector<1x1x1xf32>
      %23 = vector.broadcast %22 : f32 to vector<1x8x128xf32>
      %c0_14 = arith.constant 0 : index
      %c0_15 = arith.constant 0 : index
      %c0_16 = arith.constant 0 : index
      %24 = vector.load %arg4[%c0_14, %c0_15, %c0_16] : memref<1x8x128xf32, #tpu.memory_space<vmem>>, vector<1x8x128xf32>
      tpu.vector_store %arg4[%c0_14, %c0_15, %c0_16], %23 {strides = array<i32>} : memref<1x8x128xf32, #tpu.memory_space<vmem>>, vector<1x8x128xf32>,
    } else {
    }
    return
  }
  func.func @transform_0(%arg0: i32, %arg1: i32) -> (i32, i32) {
    %c1_i32 = arith.constant 1 : i32
    %0 = arith.muli %arg0, %c1_i32 : i32
    %1 = arith.addi %0, %arg1 : i32
    %c0_i32 = arith.constant 0 : i32
    %2 = arith.minsi %1, %c0_i32 : i32
    %c0_i32_0 = arith.constant 0 : i32
    %c0_i32_1 = arith.constant 0 : i32
    return %2, %c0_i32_0 : i32, i32
  }
  func.func @transform_1(%arg0: i32, %arg1: i32) -> (i32, i32) {
    %c1_i32 = arith.constant 1 : i32
    %0 = arith.muli %arg0, %c1_i32 : i32
    %1 = arith.addi %0, %arg1 : i32
    %c0_i32 = arith.constant 0 : i32
    %c0_i32_0 = arith.constant 0 : i32
    return %1, %c0_i32 : i32, i32
  }
  func.func @transform_2(%arg0: i32, %arg1: i32) -> (i32, i32, i32) {
    %c0_i32 = arith.constant 0 : i32
    %c0_i32_0 = arith.constant 0 : i32
    %c0_i32_1 = arith.constant 0 : i32
    return %arg0, %c0_i32, %c0_i32_0 : i32, i32, i32
  }
}

</mosaic_0001>

<bundles_post_ra>
// kernel: tpu_custom_call.1
= control target key start
LH: loop header
LB: loop body
LE: loop exit
PB: predicated region body
PF: predicated region fallthrough
CT: control target
= control target key end

     0   :  { %s195_s0 = inlined_call_operand.vmem [shape: f32[8,16], index: 0, kind: input, shape index: {}]   ;;  %s196_s1 = inlined_call_operand.vmem [shape: s32[8,1], index: 1, kind: input, shape index: {}]   ;;  %s197_s2 = inlined_call_operand.hbm [shape: f32[1,8,128], index: 2, kind: output, shape index: {}]  }
   0x1   :  { %v64_v0 = vld [vmem:[%s196_s1] sm:$0xff] }
   0x2   :  { %7 = vsyncpa [#allocation4], 0  ;;  %v156_v1 = vmov 0   ;;  %vm60_vm0 = vcmask 122880   ;;  %v157_v2 = vmov 0.0   ;;  %v65_v3 = vlaneseq  ;;  %v63_v5 = vld [vmem:[%s195_s0] sm:$0xff] }
   0x3   :  { %131 = vset.pattern.permute.xlu0 %v156_v1  ;;  %61 = vst.msk [vmem:[#allocation2] sm:$0x1] %vm60_vm0, %v157_v2  ;;  %vm73_vm1 = vcmask 130048   ;;  %s158_s0 = smov [#allocation3]  }
   0x4   :  { %68 = vperm.xlu0 %131, %v64_v0   ;;  %v66_v4 = vand.u32 127, %v65_v3  ;;  %s106_s1 = sshll.u32 %s158_s0, 4  ;;  %s107_s1 = int_to_ptr.vmem [resolvable:$true] %s106_s1 }
   0x5   :  { %s132_s14 = scalar_lea.vmem %s107_s1, 128  ;;  %p137_p1 = scmp.lt.s32.totalorder %s107_s1, %s107_s1 }
   0x6   :  { %p133_p0 = scmp.ne.s32.totalorder %s107_s1, %s132_s14  ;;  %p138_p2 = scmp.lt.s32.totalorder %s132_s14, %s132_s14 }
   0x8   :  { %p139_p3 = por %p138_p2, %p137_p1 }
   0xa   :  { %v72_v14 = vld [vmem:[#allocation2] sm:$0x1]  ;;  %p140_p4 = pnand %p139_p3, %p133_p0 }
  0x83   :  { %v69_v6 = vpop.permute.xlu0 %68 }
  0x84   :  { %vm70_vm2 = vcmp.eq.s32.totalorder %v66_v4, %v69_v6 }
  0x85   :  { %v71_v7 = vsel %vm70_vm2, %v63_v5, 0.0 }
  0x86   :  { %v74_v8 = vsel %vm73_vm1, %v71_v7, 0.0 }
  0x87   :  { %v75_v9 = vrot.slane %v74_v8, 4 }
  0x89   :  { %v76_v10 = vadd.f32 %v75_v9, %v74_v8 }
  0x8b   :  { %v77_v11 = vrot.slane %v76_v10, 2 }
  0x8d   :  { %v78_v12 = vadd.f32 %v77_v11, %v76_v10 }
  0x8f   :  { %v79_v13 = vrot.slane %v78_v12, 1 }
  0x91   :  { %v80_v15 = vadd.f32 %v79_v13, %v78_v12 }
  0x93   :  { %v81_v16 = vadd.f32 %v80_v15, %v72_v14 }
  0x95   :  { %83 = vst.msk [vmem:[#allocation2] sm:$0x1] %vm60_vm0, %v81_v16 }
  0x9c   :  { %v87_v17 = vld [vmem:[#allocation2] sm:$0x1] }
  0x9d   :  { %v88_v18 = vsel %vm60_vm0, %v87_v17, 0.0 }
  0x9e   :  { %89 = vadd.xlane.f32.xlu0 %v88_v18 }
 0x12b   :  { %v90_v19 = vpop.xlane.xlu0 %89 }
 0x12c   :  { %v91_v20 = vrot.slane %v90_v19, 4 }
 0x12e   :  { %v92_v21 = vadd.f32 %v91_v20, %v90_v19 }
 0x130   :  { %v93_v22 = vrot.slane %v92_v21, 2 }
 0x132   :  { %v94_v23 = vadd.f32 %v93_v22, %v92_v21 }
 0x134   :  { %v95_v24 = vrot.slane %v94_v23, 1 }
 0x136   :  { %v96_v25 = vadd.f32 %v95_v24, %v94_v23 }
 0x138   :  { %126 = vpush %v96_v25 }
 0x169   :  { %s127_s13 = spop %126 }
 0x16a   :  { %v98_v26 = vstv %s127_s13 }
 0x16b   :  { %99 = vst [vmem:[#allocation3] sm:$0xff] %v98_v26 }
 0x16c   :  { %143 = shalt.err (!%p140_p4)
}
 0x16d   :  { %s144_s17 = scalar_lea.hbm %s197_s2, 128 }
 0x16e   :  { %p145_p5 = scmp.ne.s32.totalorder %s197_s2, %s144_s17  ;;  %p148_p6 = scmp.lt.u32.totalorder %s144_s17, %s197_s2 }
 0x170   :  { %p150_p7 = pnand %p148_p6, %p145_p5 }
 0x172   :  { %153 = shalt.err (!%p150_p7)
}
 0x173   :  { %109 = dma.vmem_to_hbm [thread:$0]  %s107_s1, 128, %s197_s2, [#allocation4]  }
 0x174   :  { %154 = dma.done.wait [#allocation4], 128  }
 0x175   :  { %155 = vsyncadd [#allocation4], 4294967168 }
 0x176   :  { %113 = vsyncpa [#allocation4], 1 }

</bundles_post_ra>
